<compile_context>
chip_gen: v7x
topology: tpu7x:2x2x1
jax: 0.10.0
libtpu: 0.0.40
codegen_flags: <defaults>
</compile_context>

<pallas_src>
import functools

import jax
import jax.numpy as jnp
from jax.experimental import pallas as pl
from jax.experimental.pallas import tpu as pltpu


def _round_up(x, m):
    return (x + m - 1) // m * m


# ---------------------------------------------------------------------------
# Kernel
# ---------------------------------------------------------------------------
def _patch_embed_kernel(x_ref, w_ref, b_ref, o_ref):
    # x_ref: (tm, K) bf16   w_ref: (K, E_pad) bf16
    # b_ref: (1, E_pad) f32 o_ref: (tm, E_pad) f32 or bf16
    acc = jnp.dot(x_ref[...], w_ref[...], preferred_element_type=jnp.float32)
    acc = acc + b_ref[...]                       # bias broadcast over rows (f32)
    o_ref[...] = jnp.maximum(acc, 0.0).astype(o_ref.dtype)


# ---------------------------------------------------------------------------
# Host-side glue
# ---------------------------------------------------------------------------
def _patchify(x, patch_size, dtype):
    """torch.nn.Unfold(kernel=P, stride=P) followed by transpose(-1, -2).

    x: [B, C, H, W] -> [B, L, C*P*P] with feature ordering (C, kh, kw) and
    patches ordered row-major over (H/P, W/P), matching PyTorch Unfold.
    The cast to `dtype` is fused with the transpose materialization.
    """
    B, C, H, W = x.shape
    P = patch_size
    Hp, Wp = H // P, W // P
    x = x.reshape(B, C, Hp, P, Wp, P)
    x = jnp.transpose(x, (0, 2, 4, 1, 3, 5)).astype(dtype)   # [B, Hp, Wp, C, P, P]
    return x.reshape(B, Hp * Wp, C * P * P)


def _vmem_capacity_bytes():
    """Physical VMEM of the local TPU generation (conservative fallback)."""
    try:
        info = pltpu.get_tpu_info()
        cap = int(getattr(info, "vmem_capacity_bytes", 0))
        if cap > 0:
            return cap
    except Exception:
        pass
    return 64 * 1024 * 1024          # smallest current generation (v7x per-TC)


def _vmem_need(tm, K, E_pad, out_bytes):
    return (2 * tm * K * 2              # bf16 activation tile (double-buffered)
            + 2 * tm * E_pad * out_bytes  # output tile (double-buffered)
            + 2 * K * E_pad * 2         # resident bf16 weight (default dbl-buffer)
            + 2 * E_pad * 4)            # f32 bias


def _select_tm(M, K, E_pad, out_bytes, budget):
    """Pick the row tile (multiple of 16, <=1024) under the VMEM budget.

    Prefers (a) a tile that divides M exactly so the pad/slice HBM passes are
    skipped and (b) at least two grid steps when there is enough work so both
    v7x TensorCores are fed.
    """
    t = min(1024, _round_up(M, 16))
    while t > 16 and _vmem_need(t, K, E_pad, out_bytes) > budget:
        t = max(16, _round_up(t // 2, 16))
    t_max = t
    if M > t_max:
        for cand in range(t_max, 127, -16):       # divisor of M -> no padding
            if M % cand == 0:
                return cand
        return t_max
    if M >= 512:                                   # split once for v7x's 2nd TC
        half = _round_up((M + 1) // 2, 16)
        for cand in range(half, 127, -16):
            if M % cand == 0:
                return cand
        return half
    return t_max


def prepare_patch_embed_params(weight, bias):
    """One-time (model-load) layout prep.

    weight: [E, K] (PyTorch nn.Linear layout), bias: [E]
    returns (w_kE: [K, E_pad] bf16, b_1E: [1, E_pad] f32, E)
    """
    E, K = weight.shape
    E_pad = _round_up(E, 128)                     # lane-dense output stores
    w_kE = jnp.asarray(weight).T.astype(jnp.bfloat16)        # [K, E]
    b_1E = jnp.asarray(bias, jnp.float32).reshape(1, E)
    if E_pad != E:
        w_kE = jnp.pad(w_kE, ((0, 0), (0, E_pad - E)))
        b_1E = jnp.pad(b_1E, ((0, 0), (0, E_pad - E)))
    return w_kE, b_1E, E


@functools.partial(jax.jit, static_argnames=("patch_size", "embed_dim", "out_dtype"))
def patch_embed_apply(x, w_kE, b_1E, *, patch_size, embed_dim, out_dtype=None):
    """x: [B, C, H, W] f32, w_kE: [K, E_pad] bf16, b_1E: [1, E_pad] f32.

    Returns [B, n_patches, embed_dim] in `out_dtype` (default: x.dtype).
    Passing out_dtype=jnp.bfloat16 halves the kernel's output HBM stream.
    """
    B, C, H, W = x.shape
    P = patch_size
    assert H % P == 0 and W % P == 0, "spatial dims must be divisible by patch_size"
    K, E_pad = w_kE.shape
    E = embed_dim

    req_dtype = jnp.dtype(out_dtype) if out_dtype is not None else jnp.dtype(x.dtype)
    kernel_out_dtype = (jnp.bfloat16 if req_dtype == jnp.dtype(jnp.bfloat16)
                        else jnp.float32)
    out_bytes = jnp.dtype(kernel_out_dtype).itemsize

    # Patchify (Unfold + transpose) with the bf16 downcast fused in.
    patches = _patchify(x, P, jnp.bfloat16)                 # [B, L, K] bf16
    L = patches.shape[1]
    M = B * L

    # Generation-aware VMEM plan (v7x: 64 MiB physical, v5e/v6e: 128 MiB).
    cap = _vmem_capacity_bytes()
    budget = min(cap // 2, 64 * 1024 * 1024)
    tm = _select_tm(M, K, E_pad, out_bytes, budget)
    M_pad = _round_up(M, tm)
    need = _vmem_need(tm, K, E_pad, out_bytes)
    vmem_limit = int(min(cap * 3 // 4, max(32 * 1024 * 1024, need + (8 << 20))))

    x2d = patches.reshape(M, K)
    if M_pad != M:
        x2d = jnp.pad(x2d, ((0, M_pad - M), (0, 0)))

    cost = pl.CostEstimate(
        flops=2 * M_pad * K * E_pad,
        transcendentals=0,
        bytes_accessed=(M_pad * K * 2 + K * E_pad * 2 + E_pad * 4
                        + M_pad * E_pad * out_bytes),
    )

    out2d = pl.pallas_call(
        _patch_embed_kernel,
        out_shape=jax.ShapeDtypeStruct((M_pad, E_pad), kernel_out_dtype),
        grid_spec=pltpu.PrefetchScalarGridSpec(
            num_scalar_prefetch=0,
            grid=(M_pad // tm,),
            in_specs=[
                pl.BlockSpec((tm, K), lambda i: (i, 0)),      # activation tile
                # Constant block index -> fetched once, resident across steps.
                pl.BlockSpec((K, E_pad), lambda i: (0, 0)),   # full bf16 weight
                pl.BlockSpec((1, E_pad), lambda i: (0, 0)),   # f32 bias
            ],
            out_specs=pl.BlockSpec((tm, E_pad), lambda i: (i, 0)),
        ),
        compiler_params=pltpu.CompilerParams(
            dimension_semantics=("parallel",),
            vmem_limit_bytes=vmem_limit),
        cost_estimate=cost,
    )(x2d, w_kE, b_1E)

    if M_pad != M or E_pad != E:
        out2d = out2d[:M, :E]
    out = out2d.reshape(B, L, E)
    if out.dtype != req_dtype:
        out = out.astype(req_dtype)
    return out


def patch_embedding_forward(x, weight, bias, *, patch_size, out_dtype=None):
    """Drop-in forward: prepares the weight layout per call (prefer hoisting
    prepare_patch_embed_params to model-load time in real use)."""
    w_kE, b_1E, E = prepare_patch_embed_params(weight, bias)
    return patch_embed_apply(x, w_kE, b_1E, patch_size=patch_size,
                             embed_dim=E, out_dtype=out_dtype)


def _reference_forward(x, weight, bias, patch_size):
    patches = _patchify(x, patch_size, jnp.float32)
    return jnp.maximum(jnp.einsum("blk,ek->ble", patches, weight) + bias, 0.0)


if __name__ == "__main__":
    # Small shapes consistent with the module's forward.
    batch = 2
    in_channels = 4
    img_size = 16
    patch_size = 4
    embed_dim = 32
    K = in_channels * patch_size ** 2            # 64
    n_patches = (img_size // patch_size) ** 2    # 16

    key = jax.random.PRNGKey(0)
    kx, kw, kb = jax.random.split(key, 3)
    x = jax.random.normal(kx, (batch, in_channels, img_size, img_size), jnp.float32)
    # Deterministic nn.Linear-style init (uniform in +/- 1/sqrt(K)).
    bound = 1.0 / (K ** 0.5)
    weight = jax.random.uniform(kw, (embed_dim, K), jnp.float32, -bound, bound)
    bias = jax.random.uniform(kb, (embed_dim,), jnp.float32, -bound, bound)

    # One-time weight layout prep (hoisted out of the per-call path).
    w_kE, b_1E, E = prepare_patch_embed_params(weight, bias)

    out = patch_embed_apply(x, w_kE, b_1E, patch_size=patch_size, embed_dim=E)
    out = jax.block_until_ready(out)

    ref = _reference_forward(x, weight, bias, patch_size)
    assert out.shape == (batch, n_patches, embed_dim), out.shape
    # bf16 matmul inputs -> bf16-appropriate tolerance vs the f32 reference.
    assert jnp.allclose(out, ref, atol=3e-2, rtol=3e-2), "mismatch vs f32 reference"

    # bf16-output path (for downstream-in-bf16 stacks): halves the store stream.
    out_bf16 = patch_embed_apply(x, w_kE, b_1E, patch_size=patch_size,
                                 embed_dim=E, out_dtype=jnp.bfloat16)
    out_bf16 = jax.block_until_ready(out_bf16)
    assert out_bf16.shape == (batch, n_patches, embed_dim)
    assert jnp.allclose(out_bf16.astype(jnp.float32), ref, atol=5e-2, rtol=5e-2)

    print("KERNEL_OK")
</pallas_src>

<mosaic_0001>
module attributes {stable_mosaic.version = 11 : i64} {
  func.func @_patch_embed_kernel(%arg0: i32, %arg1: memref<32x64xbf16, #tpu.memory_space<vmem>>, %arg2: memref<64x128xbf16, #tpu.memory_space<vmem>>, %arg3: memref<1x128xf32, #tpu.memory_space<vmem>>, %arg4: memref<32x128xf32, #tpu.memory_space<vmem>>) attributes {dimension_semantics = [#tpu.dimension_semantics<parallel>], iteration_bounds = array<i64: 1>, scalar_prefetch = 0 : i64, scratch_operands = 0 : i64, tpu.core_type = #tpu.core_type<tc>, window_params = [{transform_indices = @transform_0, window_bounds = array<i64: 32, 64>}, {pipeline_mode = #tpu.pipeline_mode<synchronous>, transform_indices = @transform_1, window_bounds = array<i64: 64, 128>}, {pipeline_mode = #tpu.pipeline_mode<synchronous>, transform_indices = @transform_2, window_bounds = array<i64: 1, 128>}, {transform_indices = @transform_3, window_bounds = array<i64: 32, 128>}]} {
    %c0 = arith.constant 0 : index
    %c0_0 = arith.constant 0 : index
    %0 = vector.load %arg1[%c0, %c0_0] : memref<32x64xbf16, #tpu.memory_space<vmem>>, vector<32x64xbf16>
    %c0_1 = arith.constant 0 : index
    %c0_2 = arith.constant 0 : index
    %1 = vector.load %arg2[%c0_1, %c0_2] : memref<64x128xbf16, #tpu.memory_space<vmem>>, vector<64x128xbf16>
    %cst = arith.constant dense<0.000000e+00> : vector<32x128xf32>
    %2 = tpu.matmul %0, %1, %cst {dimension_numbers = #tpu.dot_dimension_numbers<[1], [0], [0], [1], [0, 0, 1, 1], [], []>} : vector<32x64xbf16>, vector<64x128xbf16>, vector<32x128xf32> -> vector<32x128xf32>
    %c0_3 = arith.constant 0 : index
    %c0_4 = arith.constant 0 : index
    %3 = vector.load %arg3[%c0_3, %c0_4] : memref<1x128xf32, #tpu.memory_space<vmem>>, vector<1x128xf32>
    %4 = vector.broadcast %3 : vector<1x128xf32> to vector<32x128xf32>
    %5 = arith.addf %2, %4 : vector<32x128xf32>
    %cst_5 = arith.constant 0.000000e+00 : f32
    %6 = vector.broadcast %cst_5 : f32 to vector<32x128xf32>
    %7 = arith.maximumf %5, %6 : vector<32x128xf32>
    %c0_6 = arith.constant 0 : index
    %c0_7 = arith.constant 0 : index
    %8 = vector.load %arg4[%c0_6, %c0_7] : memref<32x128xf32, #tpu.memory_space<vmem>>, vector<32x128xf32>
    tpu.vector_store %arg4[%c0_6, %c0_7], %7 {strides = array<i32>} : memref<32x128xf32, #tpu.memory_space<vmem>>, vector<32x128xf32>,
    return
  }
  func.func @transform_0(%arg0: i32) -> (i32, i32) {
    %c0_i32 = arith.constant 0 : i32
    %c0_i32_0 = arith.constant 0 : i32
    return %arg0, %c0_i32 : i32, i32
  }
  func.func @transform_1(%arg0: i32) -> (i32, i32) {
    %c0_i32 = arith.constant 0 : i32
    %c0_i32_0 = arith.constant 0 : i32
    %c0_i32_1 = arith.constant 0 : i32
    return %c0_i32, %c0_i32_0 : i32, i32
  }
  func.func @transform_2(%arg0: i32) -> (i32, i32) {
    %c0_i32 = arith.constant 0 : i32
    %c0_i32_0 = arith.constant 0 : i32
    %c0_i32_1 = arith.constant 0 : i32
    return %c0_i32, %c0_i32_0 : i32, i32
  }
  func.func @transform_3(%arg0: i32) -> (i32, i32) {
    %c0_i32 = arith.constant 0 : i32
    %c0_i32_0 = arith.constant 0 : i32
    return %arg0, %c0_i32 : i32, i32
  }
}

</mosaic_0001>

<bundles_post_ra>
// kernel: patch_embed_apply.1
= control target key start
LH: loop header
LB: loop body
LE: loop exit
PB: predicated region body
PF: predicated region fallthrough
CT: control target
= control target key end

     0   :  { %vm69_vm0 = vcmask 523264   ;;  %s265_s0 = inlined_call_operand.vmem [shape: bf16[32,64], index: 0, kind: input, shape index: {}]   ;;  %s266_s1 = inlined_call_operand.vmem [shape: bf16[64,128], index: 1, kind: input, shape index: {}]   ;;  %s267_s2 = inlined_call_operand.vmem [shape: f32[1,128], index: 2, kind: input, shape index: {}]   ;;  %s268_s3 = inlined_call_operand.hbm [shape: f32[32,128], index: 3, kind: output, shape index: {}]  }
   0x1   :  { %v179_v0 = vld [vmem:[%s266_s1] sm:$0xff]   ;;  %v180_v1 = vld [vmem:[%s266_s1 + $0x8] sm:$0xff]   ;;  %v181_v2 = vld [vmem:[%s266_s1 + $0x10] sm:$0xff]  }
   0x2   :  { %164 = vmatprep.subr.bf16.mxu0 %v179_v0  ;;  %v183_v3 = vld [vmem:[%s265_s0] sm:$0xff]  }
   0x3   :  { %165 = vmatpush3.bf16.msra.mxu0 %v179_v0  ;;  %172 = vmatprep.mubr.msk.bf16.mxu0 %vm69_vm0, %v183_v3 }
   0x4   :  { %166 = vmatprep.subr.bf16.mxu0 %v180_v1 }
   0x5   :  { %8 = vsyncpa [#allocation3], 0  ;;  %v182_v4 = vld [vmem:[%s266_s1 + $0x18] sm:$0xff]   ;;  %v184_v5 = vld [vmem:[%s265_s0 + $0x8] sm:$0xff]   ;;  %s209_s26 = smov [#allocation2]  }
   0x6   :  { %v149_v6 = vld [vmem:[%s267_s2] ss:$0 sm:$0xff]  ;;  %s138_s27 = sshll.u32 %s209_s26, 4  ;;  %s139_s27 = int_to_ptr.vmem [resolvable:$true] %s138_s27 }
   0x7   :  { %167 = vmatpush3.bf16.msra.mxu0 %v180_v1  ;;  %s185_s0 = scalar_lea.vmem %s139_s27, 512  ;;  %p190_p1 = scmp.lt.s32.totalorder %s139_s27, %s139_s27 }
   0x8   :  { %168 = vmatprep.subr.bf16.mxu0 %v181_v2  ;;  %p186_p0 = scmp.ne.s32.totalorder %s139_s27, %s185_s0  ;;  %p191_p2 = scmp.lt.s32.totalorder %s185_s0, %s185_s0 }
   0xa   :  { %p192_p3 = por %p191_p2, %p190_p1 }
   0xb   :  { %169 = vmatpush3.bf16.msra.mxu0 %v181_v2 }
   0xc   :  { %170 = vmatprep.subr.bf16.mxu0 %v182_v4  ;;  %p193_p4 = pnand %p192_p3, %p186_p0 }
   0xf   :  { %171 = vmatpush3.bf16.msra.mxu0 %v182_v4 }
  0x12   :  { %173 = vmatmul.mubr.msk.bf16.vlgmr.msra.gmra.mrb[0].mxu0 %vm69_vm0, %v184_v5 }
  0xe5   :  { %v174_v7 = vpop.f32.mrb[0].mxu0 }
  0xe6   :  { %v119_v8 = vadd.f32 %v174_v7, %v149_v6  ;;  %v110_v9 = vpop.f32.mrb[1].mxu0 }
  0xe7   :  { %v111_v10 = vadd.f32 %v149_v6, %v110_v9  ;;  %v175_v11 = vpop.f32.mrb[2].mxu0 }
  0xe8   :  { %v127_v12 = vmax.f32 %v119_v8, 0.0  ;;  %v122_v13 = vadd.f32 %v175_v11, %v149_v6  ;;  %v113_v14 = vpop.f32.mrb[3].mxu0 }
  0xe9   :  { %v125_v15 = vmax.f32 %v111_v10, 0.0  ;;  %v114_v16 = vadd.f32 %v149_v6, %v113_v14 }
  0xea   :  { %131 = vst [vmem:[#allocation2 + $0x10] sm:$0xff] %v127_v12  ;;  %v128_v17 = vmax.f32 %v122_v13, 0.0 }
  0xeb   :  { %129 = vst [vmem:[#allocation2] sm:$0xff] %v125_v15  ;;  %v126_v18 = vmax.f32 %v114_v16, 0.0 }
  0xec   :  { %132 = vst [vmem:[#allocation2 + $0x18] sm:$0xff] %v128_v17 }
  0xed   :  { %130 = vst [vmem:[#allocation2 + $0x8] sm:$0xff] %v126_v18 }
  0xee   :  { %196 = shalt.err (!%p193_p4)
}
  0xef   :  { %s197_s28 = scalar_lea.hbm %s268_s3, 512 }
  0xf0   :  { %p198_p5 = scmp.ne.s32.totalorder %s268_s3, %s197_s28  ;;  %p201_p6 = scmp.lt.u32.totalorder %s197_s28, %s268_s3 }
  0xf2   :  { %p203_p7 = pnand %p201_p6, %p198_p5 }
  0xf4   :  { %206 = shalt.err (!%p203_p7)
}
  0xf5   :  { %s210_s6 = smov 128   ;;  %s211_s7 = smov 8  }
  0xf6   :  { %144 = dma.vmem_to_hbm [thread:$0]  %s139_s27, 512, %s268_s3, [#allocation3], %s210_s6, %s210_s6, %s211_s7  }
  0xf7   :  { %207 = dma.done.wait [#allocation3], 512  }
  0xf8   :  { %208 = vsyncadd [#allocation3], 4294966784 }
  0xf9   :  { %148 = vsyncpa [#allocation3], 1 }

</bundles_post_ra>
